<compile_context>
chip_gen: v7x
topology: tpu7x:2x2x1
jax: 0.10.0
libtpu: 0.0.40
codegen_flags: <defaults>
</compile_context>

<pallas_src>
import jax
import jax.numpy as jnp
from jax.experimental import pallas as pl
from jax.experimental.pallas import tpu as pltpu

# Small, deterministic hyper-parameters (stand-ins for basic_hparams.DEFAULT_HPARAMS)
V = 64            # input_size (vocab)
E = 32            # embedding_size
H = 32            # hidden_size
GC = 4 * H        # fused gate width: [r | z | n_in | n_hid] = 128 lanes
VPAD = 128        # vocab padded to a full lane width for lane-dense logits/softmax
NEG_BIG = -1e30   # padded-vocab logit bias (softmax -> ~0); keep this math in f32


def decoder_kernel(tok_ref,        # scalar-prefetch (SMEM) int32, shape (T,)
                   emb_ref,        # (V, E)      embedding table        (resident)
                   h0_ref,         # (1, H)      initial hidden         (resident)
                   wx_ref,         # (E, GC)     input-side gate weights (resident)
                   wh_ref,         # (H, GC)     hidden-side gate weights(resident)
                   bc_ref,         # (1, GC)     fused gate biases      (resident)
                   wl_ref,         # (H, VPAD)   linear weight, padded  (resident)
                   bl_ref,         # (1, VPAD)   linear bias,   padded  (resident)
                   out_ref,        # (T, H)      per-step GRU output
                   sm_ref):        # (T, VPAD)   per-step softmax (padded)
    T = tok_ref.shape[0]

    # Hoist resident weight loads out of the unrolled step loop.
    wx = wx_ref[...]
    wh = wh_ref[...]
    bc = bc_ref[...]

    h = h0_ref[...]                                   # (1, H), carried in vregs
    for t in range(T):                                # static T -> fully unrolled
        tok = tok_ref[t]
        # TODO(synk): for a realistic vocab, gather only the needed embedding row
        #             via a pl.Element(1) BlockSpec / one-row async copy and tile
        #             the output projection over V instead of keeping both resident
        #             (matters first on v7x's 64 MiB VMEM).
        x = emb_ref[pl.ds(tok, 1), :]                 # (1, E) row gather

        # Gate pre-activations: g = [r | z | n_in | n_hid]  (no lane concat)
        g = (jnp.dot(x, wx, preferred_element_type=jnp.float32)
             + jnp.dot(h, wh, preferred_element_type=jnp.float32)
             + bc)                                    # (1, 4H)

        rz = jax.nn.sigmoid(g[:, 0:2 * H])            # one EUP pass for r and z
        r = rz[:, 0:H]
        z = rz[:, H:2 * H]
        n = jnp.tanh(g[:, 2 * H:3 * H] + r * g[:, 3 * H:4 * H])  # b_hn inside r-product
        h = (1.0 - z) * n + z * h                     # (1, H)

        out_ref[pl.ds(t, 1), :] = h                   # static-offset row store

    # Batched projection + softmax over all T steps (off the recurrent chain).
    hs = out_ref[...]                                 # (T, H)
    logits = jnp.dot(hs, wl_ref[...], preferred_element_type=jnp.float32) + bl_ref[...]
    m = jnp.max(logits, axis=-1, keepdims=True)
    e = jnp.exp(logits - m)
    s = jnp.sum(e, axis=-1, keepdims=True)
    sm_ref[...] = e / s                               # one lane-dense (T, 128) store


def init_params(key):
    """Raw parameters in PyTorch layout (nn.Embedding / nn.GRU / nn.Linear)."""
    ks = jax.random.split(key, 7)
    scale = 0.1
    return {
        "emb":  scale * jax.random.normal(ks[0], (V, E), jnp.float32),
        "w_ih": scale * jax.random.normal(ks[1], (3 * H, E), jnp.float32),
        "w_hh": scale * jax.random.normal(ks[2], (3 * H, H), jnp.float32),
        "b_ih": scale * jax.random.normal(ks[3], (3 * H,), jnp.float32),
        "b_hh": scale * jax.random.normal(ks[4], (3 * H,), jnp.float32),
        "w_l":  scale * jax.random.normal(ks[5], (V, H), jnp.float32),
        "b_l":  scale * jax.random.normal(ks[6], (V,), jnp.float32),
    }


def prepare_params(raw):
    """One-time prep (hoisted out of the forward): transpose, fuse, pad."""
    w_ih, w_hh = raw["w_ih"], raw["w_hh"]          # (3H, E), (3H, H)
    b_ih, b_hh = raw["b_ih"], raw["b_hh"]          # (3H,),   (3H,)
    w_l, b_l = raw["w_l"], raw["b_l"]              # (V, H),  (V,)

    # Input-side gate weights, columns [r | z | n_in | 0]  -> (E, 4H)
    wx = jnp.zeros((E, GC), jnp.float32)
    wx = wx.at[:, 0:H].set(w_ih[0:H].T)                 # W_ir
    wx = wx.at[:, H:2 * H].set(w_ih[H:2 * H].T)         # W_iz
    wx = wx.at[:, 2 * H:3 * H].set(w_ih[2 * H:3 * H].T) # W_in

    # Hidden-side gate weights, columns [r | z | 0 | n_hid] -> (H, 4H)
    wh = jnp.zeros((H, GC), jnp.float32)
    wh = wh.at[:, 0:H].set(w_hh[0:H].T)                 # W_hr
    wh = wh.at[:, H:2 * H].set(w_hh[H:2 * H].T)         # W_hz
    wh = wh.at[:, 3 * H:4 * H].set(w_hh[2 * H:3 * H].T) # W_hn

    # r/z biases pre-summed; n-gate biases kept separate (PyTorch GRU semantics).
    b_comb = jnp.concatenate([
        b_ih[0:H] + b_hh[0:H],          # b_ir + b_hr
        b_ih[H:2 * H] + b_hh[H:2 * H],  # b_iz + b_hz
        b_ih[2 * H:3 * H],              # b_in
        b_hh[2 * H:3 * H],              # b_hn
    ]).reshape(1, GC)

    # Linear weights/bias padded to a lane-dense 128-wide vocab axis.
    w_l_pad = jnp.zeros((H, VPAD), jnp.float32).at[:, :V].set(w_l.T)
    b_l_pad = jnp.full((VPAD,), NEG_BIG, jnp.float32).at[:V].set(b_l).reshape(1, VPAD)

    return {"emb": raw["emb"].astype(jnp.float32),
            "wx": wx, "wh": wh, "b_comb": b_comb,
            "w_l_pad": w_l_pad, "b_l_pad": b_l_pad}


def decoder_forward(tokens, hidden, kp):
    """tokens: int array, any shape with T total elements (T decode steps, all
    processed inside ONE pallas_call / ONE grid step); hidden: (1, 1, H).
    Returns (output (T, H), softmax (T, V), hidden_state (1, 1, H)).
    For T == 1 this matches the PyTorch module's forward exactly."""
    tok = jnp.clip(tokens.reshape(-1).astype(jnp.int32), 0, V - 1)  # bound the VMEM gather
    T = tok.shape[0]
    h0 = hidden.reshape(1, H).astype(jnp.float32)

    def resident(shape):
        # Full-array block, constant block index -> DMA'd once, resident in VMEM.
        # (index_map also receives the scalar-prefetch ref.)
        return pl.BlockSpec(shape, lambda i, tok_ref: (0, 0))

    out_all, sm_pad = pl.pallas_call(
        decoder_kernel,
        out_shape=(
            jax.ShapeDtypeStruct((T, H), jnp.float32),     # GRU output per step
            jax.ShapeDtypeStruct((T, VPAD), jnp.float32),  # softmax per step (padded)
        ),
        grid_spec=pltpu.PrefetchScalarGridSpec(
            num_scalar_prefetch=1,
            grid=(1,),                                     # single step; T unrolled in-kernel
            in_specs=[
                resident((V, E)),
                resident((1, H)),
                resident((E, GC)),
                resident((H, GC)),
                resident((1, GC)),
                resident((H, VPAD)),
                resident((1, VPAD)),
            ],
            out_specs=[resident((T, H)), resident((T, VPAD))],
        ),
        compiler_params=pltpu.CompilerParams(
            dimension_semantics=("arbitrary",),            # strictly serial recurrence
        ),
    )(tok, kp["emb"], h0, kp["wx"], kp["wh"], kp["b_comb"], kp["w_l_pad"], kp["b_l_pad"])

    softmax = sm_pad[:, :V]
    hidden_state = out_all[T - 1:T].reshape(1, 1, H)   # final hidden == last GRU output
    return out_all, softmax, hidden_state


def decoder_reference(tokens, hidden, raw):
    """Pure-JAX reference matching the PyTorch module (nn.Embedding/nn.GRU/nn.Linear/Softmax)."""
    tok = tokens.reshape(-1).astype(jnp.int32)
    h = hidden.reshape(1, H).astype(jnp.float32)
    dot = lambda a, b: jnp.dot(a, b, precision=jax.lax.Precision.HIGHEST)
    outs, sms = [], []
    for t in range(tok.shape[0]):
        x = raw["emb"][tok[t]][None, :]                        # (1, E)
        gi = dot(x, raw["w_ih"].T) + raw["b_ih"]               # (1, 3H)
        gh = dot(h, raw["w_hh"].T) + raw["b_hh"]               # (1, 3H)
        r = jax.nn.sigmoid(gi[:, 0:H] + gh[:, 0:H])
        z = jax.nn.sigmoid(gi[:, H:2 * H] + gh[:, H:2 * H])
        n = jnp.tanh(gi[:, 2 * H:] + r * gh[:, 2 * H:])
        h = (1.0 - z) * n + z * h
        logits = dot(h, raw["w_l"].T) + raw["b_l"]
        outs.append(h)
        sms.append(jax.nn.softmax(logits, axis=1))
    return jnp.concatenate(outs, 0), jnp.concatenate(sms, 0), h.reshape(1, 1, H)


if __name__ == "__main__":
    key = jax.random.PRNGKey(0)
    pkey, hkey = jax.random.split(key)
    raw_params = init_params(pkey)
    kparams = prepare_params(raw_params)   # one-time prep, hoisted out of the forward

    hidden = 0.1 * jax.random.normal(hkey, (1, 1, H), jnp.float32)

    # Multi-step decode: T teacher-forced steps amortized inside one kernel call.
    T = 8
    tokens = jnp.array([3, 7, 1, 42, 13, 0, 63, 5], dtype=jnp.int32)
    output, softmax, hidden_state = decoder_forward(tokens, hidden, kparams)
    jax.block_until_ready((output, softmax, hidden_state))
    assert output.shape == (T, H)
    assert softmax.shape == (T, V)
    assert hidden_state.shape == (1, 1, H)
    assert bool(jnp.all(jnp.isfinite(softmax)))

    # Correctness vs. a pure-JAX reference of the PyTorch module.
    ref_out, ref_sm, ref_hs = decoder_reference(tokens, hidden, raw_params)
    assert bool(jnp.allclose(output, ref_out, atol=5e-3, rtol=5e-3))
    assert bool(jnp.allclose(softmax, ref_sm, atol=5e-3, rtol=5e-3))
    assert bool(jnp.allclose(hidden_state, ref_hs, atol=5e-3, rtol=5e-3))
    assert bool(jnp.allclose(jnp.sum(softmax, axis=-1), 1.0, atol=1e-5))

    # Single-step call: identical interface/semantics to the original PyTorch module
    # (_input of shape (1, 1), hidden of shape (1, 1, H)).
    out1, sm1, hs1 = decoder_forward(jnp.array([[3]], dtype=jnp.int32), hidden, kparams)
    jax.block_until_ready((out1, sm1, hs1))
    assert out1.shape == (1, H) and sm1.shape == (1, V) and hs1.shape == (1, 1, H)

    print("KERNEL_OK")
</pallas_src>

<mosaic_0001>
module attributes {stable_mosaic.version = 11 : i64} {
  func.func @decoder_kernel(%arg0: i32, %arg1: memref<8xi32, #tpu.memory_space<smem>>, %arg2: memref<64x32xf32, #tpu.memory_space<vmem>>, %arg3: memref<1x32xf32, #tpu.memory_space<vmem>>, %arg4: memref<32x128xf32, #tpu.memory_space<vmem>>, %arg5: memref<32x128xf32, #tpu.memory_space<vmem>>, %arg6: memref<1x128xf32, #tpu.memory_space<vmem>>, %arg7: memref<32x128xf32, #tpu.memory_space<vmem>>, %arg8: memref<1x128xf32, #tpu.memory_space<vmem>>, %arg9: memref<8x32xf32, #tpu.memory_space<vmem>>, %arg10: memref<8x128xf32, #tpu.memory_space<vmem>>) attributes {dimension_semantics = [#tpu.dimension_semantics<arbitrary>], iteration_bounds = array<i64: 1>, scalar_prefetch = 1 : i64, scratch_operands = 0 : i64, tpu.core_type = #tpu.core_type<tc>, window_params = [{pipeline_mode = #tpu.pipeline_mode<synchronous>, transform_indices = @transform_0, window_bounds = array<i64: 64, 32>}, {pipeline_mode = #tpu.pipeline_mode<synchronous>, transform_indices = @transform_1, window_bounds = array<i64: 1, 32>}, {pipeline_mode = #tpu.pipeline_mode<synchronous>, transform_indices = @transform_2, window_bounds = array<i64: 32, 128>}, {pipeline_mode = #tpu.pipeline_mode<synchronous>, transform_indices = @transform_3, window_bounds = array<i64: 32, 128>}, {pipeline_mode = #tpu.pipeline_mode<synchronous>, transform_indices = @transform_4, window_bounds = array<i64: 1, 128>}, {pipeline_mode = #tpu.pipeline_mode<synchronous>, transform_indices = @transform_5, window_bounds = array<i64: 32, 128>}, {pipeline_mode = #tpu.pipeline_mode<synchronous>, transform_indices = @transform_6, window_bounds = array<i64: 1, 128>}, {pipeline_mode = #tpu.pipeline_mode<synchronous>, transform_indices = @transform_7, window_bounds = array<i64: 8, 32>}, {pipeline_mode = #tpu.pipeline_mode<synchronous>, transform_indices = @transform_8, window_bounds = array<i64: 8, 128>}]} {
    %c0 = arith.constant 0 : index
    %c0_0 = arith.constant 0 : index
    %0 = vector.load %arg4[%c0, %c0_0] : memref<32x128xf32, #tpu.memory_space<vmem>>, vector<32x128xf32>
    %c0_1 = arith.constant 0 : index
    %c0_2 = arith.constant 0 : index
    %1 = vector.load %arg5[%c0_1, %c0_2] : memref<32x128xf32, #tpu.memory_space<vmem>>, vector<32x128xf32>
    %c0_3 = arith.constant 0 : index
    %c0_4 = arith.constant 0 : index
    %2 = vector.load %arg6[%c0_3, %c0_4] : memref<1x128xf32, #tpu.memory_space<vmem>>, vector<1x128xf32>
    %c0_5 = arith.constant 0 : index
    %c0_6 = arith.constant 0 : index
    %3 = vector.load %arg3[%c0_5, %c0_6] : memref<1x32xf32, #tpu.memory_space<vmem>>, vector<1x32xf32>
    %c0_7 = arith.constant 0 : index
    %4 = memref.load %arg1[%c0_7] : memref<8xi32, #tpu.memory_space<smem>>
    %5 = arith.index_cast %4 : i32 to index
    %c0_8 = arith.constant 0 : index
    %6 = vector.load %arg2[%5, %c0_8] : memref<64x32xf32, #tpu.memory_space<vmem>>, vector<1x32xf32>
    %cst = arith.constant dense<0.000000e+00> : vector<1x128xf32>
    %7 = tpu.matmul %6, %0, %cst {dimension_numbers = #tpu.dot_dimension_numbers<[1], [0], [0], [1], [0, 0, 1, 1], [], []>} : vector<1x32xf32>, vector<32x128xf32>, vector<1x128xf32> -> vector<1x128xf32>
    %cst_9 = arith.constant dense<0.000000e+00> : vector<1x128xf32>
    %8 = tpu.matmul %3, %1, %cst_9 {dimension_numbers = #tpu.dot_dimension_numbers<[1], [0], [0], [1], [0, 0, 1, 1], [], []>} : vector<1x32xf32>, vector<32x128xf32>, vector<1x128xf32> -> vector<1x128xf32>
    %9 = arith.addf %7, %8 : vector<1x128xf32>
    %10 = arith.addf %9, %2 : vector<1x128xf32>
    %11 = vector.extract_strided_slice %10 {offsets = [0, 0], sizes = [1, 64], strides = [1, 1]} : vector<1x128xf32> to vector<1x64xf32>
    %12 = arith.negf %11 : vector<1x64xf32>
    %13 = math.exp %12 : vector<1x64xf32>
    %cst_10 = arith.constant 1.000000e+00 : f32
    %14 = vector.broadcast %cst_10 : f32 to vector<1x64xf32>
    %15 = arith.addf %14, %13 : vector<1x64xf32>
    %16 = arith.divf %14, %15 : vector<1x64xf32>
    %17 = vector.extract_strided_slice %16 {offsets = [0, 0], sizes = [1, 32], strides = [1, 1]} : vector<1x64xf32> to vector<1x32xf32>
    %18 = vector.extract_strided_slice %16 {offsets = [0, 32], sizes = [1, 32], strides = [1, 1]} : vector<1x64xf32> to vector<1x32xf32>
    %19 = vector.extract_strided_slice %10 {offsets = [0, 64], sizes = [1, 32], strides = [1, 1]} : vector<1x128xf32> to vector<1x32xf32>
    %20 = vector.extract_strided_slice %10 {offsets = [0, 96], sizes = [1, 32], strides = [1, 1]} : vector<1x128xf32> to vector<1x32xf32>
    %21 = arith.mulf %17, %20 : vector<1x32xf32>
    %22 = arith.addf %19, %21 : vector<1x32xf32>
    %23 = math.tanh %22 : vector<1x32xf32>
    %cst_11 = arith.constant 1.000000e+00 : f32
    %24 = vector.broadcast %cst_11 : f32 to vector<1x32xf32>
    %25 = arith.subf %24, %18 : vector<1x32xf32>
    %26 = arith.mulf %25, %23 : vector<1x32xf32>
    %27 = arith.mulf %18, %3 : vector<1x32xf32>
    %28 = arith.addf %26, %27 : vector<1x32xf32>
    %c0_12 = arith.constant 0 : index
    %c0_13 = arith.constant 0 : index
    %29 = vector.load %arg9[%c0_12, %c0_13] : memref<8x32xf32, #tpu.memory_space<vmem>>, vector<1x32xf32>
    tpu.vector_store %arg9[%c0_12, %c0_13], %28 {strides = array<i32>} : memref<8x32xf32, #tpu.memory_space<vmem>>, vector<1x32xf32>,
    %c1 = arith.constant 1 : index
    %30 = memref.load %arg1[%c1] : memref<8xi32, #tpu.memory_space<smem>>
    %31 = arith.index_cast %30 : i32 to index
    %c0_14 = arith.constant 0 : index
    %32 = vector.load %arg2[%31, %c0_14] : memref<64x32xf32, #tpu.memory_space<vmem>>, vector<1x32xf32>
    %cst_15 = arith.constant dense<0.000000e+00> : vector<1x128xf32>
    %33 = tpu.matmul %32, %0, %cst_15 {dimension_numbers = #tpu.dot_dimension_numbers<[1], [0], [0], [1], [0, 0, 1, 1], [], []>} : vector<1x32xf32>, vector<32x128xf32>, vector<1x128xf32> -> vector<1x128xf32>
    %cst_16 = arith.constant dense<0.000000e+00> : vector<1x128xf32>
    %34 = tpu.matmul %28, %1, %cst_16 {dimension_numbers = #tpu.dot_dimension_numbers<[1], [0], [0], [1], [0, 0, 1, 1], [], []>} : vector<1x32xf32>, vector<32x128xf32>, vector<1x128xf32> -> vector<1x128xf32>
    %35 = arith.addf %33, %34 : vector<1x128xf32>
    %36 = arith.addf %35, %2 : vector<1x128xf32>
    %37 = vector.extract_strided_slice %36 {offsets = [0, 0], sizes = [1, 64], strides = [1, 1]} : vector<1x128xf32> to vector<1x64xf32>
    %38 = arith.negf %37 : vector<1x64xf32>
    %39 = math.exp %38 : vector<1x64xf32>
    %cst_17 = arith.constant 1.000000e+00 : f32
    %40 = vector.broadcast %cst_17 : f32 to vector<1x64xf32>
    %41 = arith.addf %40, %39 : vector<1x64xf32>
    %42 = arith.divf %40, %41 : vector<1x64xf32>
    %43 = vector.extract_strided_slice %42 {offsets = [0, 0], sizes = [1, 32], strides = [1, 1]} : vector<1x64xf32> to vector<1x32xf32>
    %44 = vector.extract_strided_slice %42 {offsets = [0, 32], sizes = [1, 32], strides = [1, 1]} : vector<1x64xf32> to vector<1x32xf32>
    %45 = vector.extract_strided_slice %36 {offsets = [0, 64], sizes = [1, 32], strides = [1, 1]} : vector<1x128xf32> to vector<1x32xf32>
    %46 = vector.extract_strided_slice %36 {offsets = [0, 96], sizes = [1, 32], strides = [1, 1]} : vector<1x128xf32> to vector<1x32xf32>
    %47 = arith.mulf %43, %46 : vector<1x32xf32>
    %48 = arith.addf %45, %47 : vector<1x32xf32>
    %49 = math.tanh %48 : vector<1x32xf32>
    %cst_18 = arith.constant 1.000000e+00 : f32
    %50 = vector.broadcast %cst_18 : f32 to vector<1x32xf32>
    %51 = arith.subf %50, %44 : vector<1x32xf32>
    %52 = arith.mulf %51, %49 : vector<1x32xf32>
    %53 = arith.mulf %44, %28 : vector<1x32xf32>
    %54 = arith.addf %52, %53 : vector<1x32xf32>
    %c1_19 = arith.constant 1 : index
    %c0_20 = arith.constant 0 : index
    %55 = vector.load %arg9[%c1_19, %c0_20] : memref<8x32xf32, #tpu.memory_space<vmem>>, vector<1x32xf32>
    tpu.vector_store %arg9[%c1_19, %c0_20], %54 {strides = array<i32>} : memref<8x32xf32, #tpu.memory_space<vmem>>, vector<1x32xf32>,
    %c2 = arith.constant 2 : index
    %56 = memref.load %arg1[%c2] : memref<8xi32, #tpu.memory_space<smem>>
    %57 = arith.index_cast %56 : i32 to index
    %c0_21 = arith.constant 0 : index
    %58 = vector.load %arg2[%57, %c0_21] : memref<64x32xf32, #tpu.memory_space<vmem>>, vector<1x32xf32>
    %cst_22 = arith.constant dense<0.000000e+00> : vector<1x128xf32>
    %59 = tpu.matmul %58, %0, %cst_22 {dimension_numbers = #tpu.dot_dimension_numbers<[1], [0], [0], [1], [0, 0, 1, 1], [], []>} : vector<1x32xf32>, vector<32x128xf32>, vector<1x128xf32> -> vector<1x128xf32>
    %cst_23 = arith.constant dense<0.000000e+00> : vector<1x128xf32>
    %60 = tpu.matmul %54, %1, %cst_23 {dimension_numbers = #tpu.dot_dimension_numbers<[1], [0], [0], [1], [0, 0, 1, 1], [], []>} : vector<1x32xf32>, vector<32x128xf32>, vector<1x128xf32> -> vector<1x128xf32>
    %61 = arith.addf %59, %60 : vector<1x128xf32>
    %62 = arith.addf %61, %2 : vector<1x128xf32>
    %63 = vector.extract_strided_slice %62 {offsets = [0, 0], sizes = [1, 64], strides = [1, 1]} : vector<1x128xf32> to vector<1x64xf32>
    %64 = arith.negf %63 : vector<1x64xf32>
    %65 = math.exp %64 : vector<1x64xf32>
    %cst_24 = arith.constant 1.000000e+00 : f32
    %66 = vector.broadcast %cst_24 : f32 to vector<1x64xf32>
    %67 = arith.addf %66, %65 : vector<1x64xf32>
    %68 = arith.divf %66, %67 : vector<1x64xf32>
    %69 = vector.extract_strided_slice %68 {offsets = [0, 0], sizes = [1, 32], strides = [1, 1]} : vector<1x64xf32> to vector<1x32xf32>
    %70 = vector.extract_strided_slice %68 {offsets = [0, 32], sizes = [1, 32], strides = [1, 1]} : vector<1x64xf32> to vector<1x32xf32>
    %71 = vector.extract_strided_slice %62 {offsets = [0, 64], sizes = [1, 32], strides = [1, 1]} : vector<1x128xf32> to vector<1x32xf32>
    %72 = vector.extract_strided_slice %62 {offsets = [0, 96], sizes = [1, 32], strides = [1, 1]} : vector<1x128xf32> to vector<1x32xf32>
    %73 = arith.mulf %69, %72 : vector<1x32xf32>
    %74 = arith.addf %71, %73 : vector<1x32xf32>
    %75 = math.tanh %74 : vector<1x32xf32>
    %cst_25 = arith.constant 1.000000e+00 : f32
    %76 = vector.broadcast %cst_25 : f32 to vector<1x32xf32>
    %77 = arith.subf %76, %70 : vector<1x32xf32>
    %78 = arith.mulf %77, %75 : vector<1x32xf32>
    %79 = arith.mulf %70, %54 : vector<1x32xf32>
    %80 = arith.addf %78, %79 : vector<1x32xf32>
    %c2_26 = arith.constant 2 : index
    %c0_27 = arith.constant 0 : index
    %81 = vector.load %arg9[%c2_26, %c0_27] : memref<8x32xf32, #tpu.memory_space<vmem>>, vector<1x32xf32>
    tpu.vector_store %arg9[%c2_26, %c0_27], %80 {strides = array<i32>} : memref<8x32xf32, #tpu.memory_space<vmem>>, vector<1x32xf32>,
    %c3 = arith.constant 3 : index
    %82 = memref.load %arg1[%c3] : memref<8xi32, #tpu.memory_space<smem>>
    %83 = arith.index_cast %82 : i32 to index
    %c0_28 = arith.constant 0 : index
    %84 = vector.load %arg2[%83, %c0_28] : memref<64x32xf32, #tpu.memory_space<vmem>>, vector<1x32xf32>
    %cst_29 = arith.constant dense<0.000000e+00> : vector<1x128xf32>
    %85 = tpu.matmul %84, %0, %cst_29 {dimension_numbers = #tpu.dot_dimension_numbers<[1], [0], [0], [1], [0, 0, 1, 1], [], []>} : vector<1x32xf32>, vector<32x128xf32>, vector<1x128xf32> -> vector<1x128xf32>
    %cst_30 = arith.constant dense<0.000000e+00> : vector<1x128xf32>
    %86 = tpu.matmul %80, %1, %cst_30 {dimension_numbers = #tpu.dot_dimension_numbers<[1], [0], [0], [1], [0, 0, 1, 1], [], []>} : vector<1x32xf32>, vector<32x128xf32>, vector<1x128xf32> -> vector<1x128xf32>
    %87 = arith.addf %85, %86 : vector<1x128xf32>
    %88 = arith.addf %87, %2 : vector<1x128xf32>
    %89 = vector.extract_strided_slice %88 {offsets = [0, 0], sizes = [1, 64], strides = [1, 1]} : vector<1x128xf32> to vector<1x64xf32>
    %90 = arith.negf %89 : vector<1x64xf32>
    %91 = math.exp %90 : vector<1x64xf32>
    %cst_31 = arith.constant 1.000000e+00 : f32
    %92 = vector.broadcast %cst_31 : f32 to vector<1x64xf32>
    %93 = arith.addf %92, %91 : vector<1x64xf32>
    %94 = arith.divf %92, %93 : vector<1x64xf32>
    %95 = vector.extract_strided_slice %94 {offsets = [0, 0], sizes = [1, 32], strides = [1, 1]} : vector<1x64xf32> to vector<1x32xf32>
    %96 = vector.extract_strided_slice %94 {offsets = [0, 32], sizes = [1, 32], strides = [1, 1]} : vector<1x64xf32> to vector<1x32xf32>
    %97 = vector.extract_strided_slice %88 {offsets = [0, 64], sizes = [1, 32], strides = [1, 1]} : vector<1x128xf32> to vector<1x32xf32>
    %98 = vector.extract_strided_slice %88 {offsets = [0, 96], sizes = [1, 32], strides = [1, 1]} : vector<1x128xf32> to vector<1x32xf32>
    %99 = arith.mulf %95, %98 : vector<1x32xf32>
    %100 = arith.addf %97, %99 : vector<1x32xf32>
    %101 = math.tanh %100 : vector<1x32xf32>
    %cst_32 = arith.constant 1.000000e+00 : f32
    %102 = vector.broadcast %cst_32 : f32 to vector<1x32xf32>
    %103 = arith.subf %102, %96 : vector<1x32xf32>
    %104 = arith.mulf %103, %101 : vector<1x32xf32>
    %105 = arith.mulf %96, %80 : vector<1x32xf32>
    %106 = arith.addf %104, %105 : vector<1x32xf32>
    %c3_33 = arith.constant 3 : index
    %c0_34 = arith.constant 0 : index
    %107 = vector.load %arg9[%c3_33, %c0_34] : memref<8x32xf32, #tpu.memory_space<vmem>>, vector<1x32xf32>
    tpu.vector_store %arg9[%c3_33, %c0_34], %106 {strides = array<i32>} : memref<8x32xf32, #tpu.memory_space<vmem>>, vector<1x32xf32>,
    %c4 = arith.constant 4 : index
    %108 = memref.load %arg1[%c4] : memref<8xi32, #tpu.memory_space<smem>>
    %109 = arith.index_cast %108 : i32 to index
    %c0_35 = arith.constant 0 : index
    %110 = vector.load %arg2[%109, %c0_35] : memref<64x32xf32, #tpu.memory_space<vmem>>, vector<1x32xf32>
    %cst_36 = arith.constant dense<0.000000e+00> : vector<1x128xf32>
    %111 = tpu.matmul %110, %0, %cst_36 {dimension_numbers = #tpu.dot_dimension_numbers<[1], [0], [0], [1], [0, 0, 1, 1], [], []>} : vector<1x32xf32>, vector<32x128xf32>, vector<1x128xf32> -> vector<1x128xf32>
    %cst_37 = arith.constant dense<0.000000e+00> : vector<1x128xf32>
    %112 = tpu.matmul %106, %1, %cst_37 {dimension_numbers = #tpu.dot_dimension_numbers<[1], [0], [0], [1], [0, 0, 1, 1], [], []>} : vector<1x32xf32>, vector<32x128xf32>, vector<1x128xf32> -> vector<1x128xf32>
    %113 = arith.addf %111, %112 : vector<1x128xf32>
    %114 = arith.addf %113, %2 : vector<1x128xf32>
    %115 = vector.extract_strided_slice %114 {offsets = [0, 0], sizes = [1, 64], strides = [1, 1]} : vector<1x128xf32> to vector<1x64xf32>
    %116 = arith.negf %115 : vector<1x64xf32>
    %117 = math.exp %116 : vector<1x64xf32>
    %cst_38 = arith.constant 1.000000e+00 : f32
    %118 = vector.broadcast %cst_38 : f32 to vector<1x64xf32>
    %119 = arith.addf %118, %117 : vector<1x64xf32>
    %120 = arith.divf %118, %119 : vector<1x64xf32>
    %121 = vector.extract_strided_slice %120 {offsets = [0, 0], sizes = [1, 32], strides = [1, 1]} : vector<1x64xf32> to vector<1x32xf32>
    %122 = vector.extract_strided_slice %120 {offsets = [0, 32], sizes = [1, 32], strides = [1, 1]} : vector<1x64xf32> to vector<1x32xf32>
    %123 = vector.extract_strided_slice %114 {offsets = [0, 64], sizes = [1, 32], strides = [1, 1]} : vector<1x128xf32> to vector<1x32xf32>
    %124 = vector.extract_strided_slice %114 {offsets = [0, 96], sizes = [1, 32], strides = [1, 1]} : vector<1x128xf32> to vector<1x32xf32>
    %125 = arith.mulf %121, %124 : vector<1x32xf32>
    %126 = arith.addf %123, %125 : vector<1x32xf32>
    %127 = math.tanh %126 : vector<1x32xf32>
    %cst_39 = arith.constant 1.000000e+00 : f32
    %128 = vector.broadcast %cst_39 : f32 to vector<1x32xf32>
    %129 = arith.subf %128, %122 : vector<1x32xf32>
    %130 = arith.mulf %129, %127 : vector<1x32xf32>
    %131 = arith.mulf %122, %106 : vector<1x32xf32>
    %132 = arith.addf %130, %131 : vector<1x32xf32>
    %c4_40 = arith.constant 4 : index
    %c0_41 = arith.constant 0 : index
    %133 = vector.load %arg9[%c4_40, %c0_41] : memref<8x32xf32, #tpu.memory_space<vmem>>, vector<1x32xf32>
    tpu.vector_store %arg9[%c4_40, %c0_41], %132 {strides = array<i32>} : memref<8x32xf32, #tpu.memory_space<vmem>>, vector<1x32xf32>,
    %c5 = arith.constant 5 : index
    %134 = memref.load %arg1[%c5] : memref<8xi32, #tpu.memory_space<smem>>
    %135 = arith.index_cast %134 : i32 to index
    %c0_42 = arith.constant 0 : index
    %136 = vector.load %arg2[%135, %c0_42] : memref<64x32xf32, #tpu.memory_space<vmem>>, vector<1x32xf32>
    %cst_43 = arith.constant dense<0.000000e+00> : vector<1x128xf32>
    %137 = tpu.matmul %136, %0, %cst_43 {dimension_numbers = #tpu.dot_dimension_numbers<[1], [0], [0], [1], [0, 0, 1, 1], [], []>} : vector<1x32xf32>, vector<32x128xf32>, vector<1x128xf32> -> vector<1x128xf32>
    %cst_44 = arith.constant dense<0.000000e+00> : vector<1x128xf32>
    %138 = tpu.matmul %132, %1, %cst_44 {dimension_numbers = #tpu.dot_dimension_numbers<[1], [0], [0], [1], [0, 0, 1, 1], [], []>} : vector<1x32xf32>, vector<32x128xf32>, vector<1x128xf32> -> vector<1x128xf32>
    %139 = arith.addf %137, %138 : vector<1x128xf32>
    %140 = arith.addf %139, %2 : vector<1x128xf32>
    %141 = vector.extract_strided_slice %140 {offsets = [0, 0], sizes = [1, 64], strides = [1, 1]} : vector<1x128xf32> to vector<1x64xf32>
    %142 = arith.negf %141 : vector<1x64xf32>
    %143 = math.exp %142 : vector<1x64xf32>
    %cst_45 = arith.constant 1.000000e+00 : f32
    %144 = vector.broadcast %cst_45 : f32 to vector<1x64xf32>
    %145 = arith.addf %144, %143 : vector<1x64xf32>
    %146 = arith.divf %144, %145 : vector<1x64xf32>
    %147 = vector.extract_strided_slice %146 {offsets = [0, 0], sizes = [1, 32], strides = [1, 1]} : vector<1x64xf32> to vector<1x32xf32>
    %148 = vector.extract_strided_slice %146 {offsets = [0, 32], sizes = [1, 32], strides = [1, 1]} : vector<1x64xf32> to vector<1x32xf32>
    %149 = vector.extract_strided_slice %140 {offsets = [0, 64], sizes = [1, 32], strides = [1, 1]} : vector<1x128xf32> to vector<1x32xf32>
    %150 = vector.extract_strided_slice %140 {offsets = [0, 96], sizes = [1, 32], strides = [1, 1]} : vector<1x128xf32> to vector<1x32xf32>
    %151 = arith.mulf %147, %150 : vector<1x32xf32>
    %152 = arith.addf %149, %151 : vector<1x32xf32>
    %153 = math.tanh %152 : vector<1x32xf32>
    %cst_46 = arith.constant 1.000000e+00 : f32
    %154 = vector.broadcast %cst_46 : f32 to vector<1x32xf32>
    %155 = arith.subf %154, %148 : vector<1x32xf32>
    %156 = arith.mulf %155, %153 : vector<1x32xf32>
    %157 = arith.mulf %148, %132 : vector<1x32xf32>
    %158 = arith.addf %156, %157 : vector<1x32xf32>
    %c5_47 = arith.constant 5 : index
    %c0_48 = arith.constant 0 : index
    %159 = vector.load %arg9[%c5_47, %c0_48] : memref<8x32xf32, #tpu.memory_space<vmem>>, vector<1x32xf32>
    tpu.vector_store %arg9[%c5_47, %c0_48], %158 {strides = array<i32>} : memref<8x32xf32, #tpu.memory_space<vmem>>, vector<1x32xf32>,
    %c6 = arith.constant 6 : index
    %160 = memref.load %arg1[%c6] : memref<8xi32, #tpu.memory_space<smem>>
    %161 = arith.index_cast %160 : i32 to index
    %c0_49 = arith.constant 0 : index
    %162 = vector.load %arg2[%161, %c0_49] : memref<64x32xf32, #tpu.memory_space<vmem>>, vector<1x32xf32>
    %cst_50 = arith.constant dense<0.000000e+00> : vector<1x128xf32>
    %163 = tpu.matmul %162, %0, %cst_50 {dimension_numbers = #tpu.dot_dimension_numbers<[1], [0], [0], [1], [0, 0, 1, 1], [], []>} : vector<1x32xf32>, vector<32x128xf32>, vector<1x128xf32> -> vector<1x128xf32>
    %cst_51 = arith.constant dense<0.000000e+00> : vector<1x128xf32>
    %164 = tpu.matmul %158, %1, %cst_51 {dimension_numbers = #tpu.dot_dimension_numbers<[1], [0], [0], [1], [0, 0, 1, 1], [], []>} : vector<1x32xf32>, vector<32x128xf32>, vector<1x128xf32> -> vector<1x128xf32>
    %165 = arith.addf %163, %164 : vector<1x128xf32>
    %166 = arith.addf %165, %2 : vector<1x128xf32>
    %167 = vector.extract_strided_slice %166 {offsets = [0, 0], sizes = [1, 64], strides = [1, 1]} : vector<1x128xf32> to vector<1x64xf32>
    %168 = arith.negf %167 : vector<1x64xf32>
    %169 = math.exp %168 : vector<1x64xf32>
    %cst_52 = arith.constant 1.000000e+00 : f32
    %170 = vector.broadcast %cst_52 : f32 to vector<1x64xf32>
    %171 = arith.addf %170, %169 : vector<1x64xf32>
    %172 = arith.divf %170, %171 : vector<1x64xf32>
    %173 = vector.extract_strided_slice %172 {offsets = [0, 0], sizes = [1, 32], strides = [1, 1]} : vector<1x64xf32> to vector<1x32xf32>
    %174 = vector.extract_strided_slice %172 {offsets = [0, 32], sizes = [1, 32], strides = [1, 1]} : vector<1x64xf32> to vector<1x32xf32>
    %175 = vector.extract_strided_slice %166 {offsets = [0, 64], sizes = [1, 32], strides = [1, 1]} : vector<1x128xf32> to vector<1x32xf32>
    %176 = vector.extract_strided_slice %166 {offsets = [0, 96], sizes = [1, 32], strides = [1, 1]} : vector<1x128xf32> to vector<1x32xf32>
    %177 = arith.mulf %173, %176 : vector<1x32xf32>
    %178 = arith.addf %175, %177 : vector<1x32xf32>
    %179 = math.tanh %178 : vector<1x32xf32>
    %cst_53 = arith.constant 1.000000e+00 : f32
    %180 = vector.broadcast %cst_53 : f32 to vector<1x32xf32>
    %181 = arith.subf %180, %174 : vector<1x32xf32>
    %182 = arith.mulf %181, %179 : vector<1x32xf32>
    %183 = arith.mulf %174, %158 : vector<1x32xf32>
    %184 = arith.addf %182, %183 : vector<1x32xf32>
    %c6_54 = arith.constant 6 : index
    %c0_55 = arith.constant 0 : index
    %185 = vector.load %arg9[%c6_54, %c0_55] : memref<8x32xf32, #tpu.memory_space<vmem>>, vector<1x32xf32>
    tpu.vector_store %arg9[%c6_54, %c0_55], %184 {strides = array<i32>} : memref<8x32xf32, #tpu.memory_space<vmem>>, vector<1x32xf32>,
    %c7 = arith.constant 7 : index
    %186 = memref.load %arg1[%c7] : memref<8xi32, #tpu.memory_space<smem>>
    %187 = arith.index_cast %186 : i32 to index
    %c0_56 = arith.constant 0 : index
    %188 = vector.load %arg2[%187, %c0_56] : memref<64x32xf32, #tpu.memory_space<vmem>>, vector<1x32xf32>
    %cst_57 = arith.constant dense<0.000000e+00> : vector<1x128xf32>
    %189 = tpu.matmul %188, %0, %cst_57 {dimension_numbers = #tpu.dot_dimension_numbers<[1], [0], [0], [1], [0, 0, 1, 1], [], []>} : vector<1x32xf32>, vector<32x128xf32>, vector<1x128xf32> -> vector<1x128xf32>
    %cst_58 = arith.constant dense<0.000000e+00> : vector<1x128xf32>
    %190 = tpu.matmul %184, %1, %cst_58 {dimension_numbers = #tpu.dot_dimension_numbers<[1], [0], [0], [1], [0, 0, 1, 1], [], []>} : vector<1x32xf32>, vector<32x128xf32>, vector<1x128xf32> -> vector<1x128xf32>
    %191 = arith.addf %189, %190 : vector<1x128xf32>
    %192 = arith.addf %191, %2 : vector<1x128xf32>
    %193 = vector.extract_strided_slice %192 {offsets = [0, 0], sizes = [1, 64], strides = [1, 1]} : vector<1x128xf32> to vector<1x64xf32>
    %194 = arith.negf %193 : vector<1x64xf32>
    %195 = math.exp %194 : vector<1x64xf32>
    %cst_59 = arith.constant 1.000000e+00 : f32
    %196 = vector.broadcast %cst_59 : f32 to vector<1x64xf32>
    %197 = arith.addf %196, %195 : vector<1x64xf32>
    %198 = arith.divf %196, %197 : vector<1x64xf32>
    %199 = vector.extract_strided_slice %198 {offsets = [0, 0], sizes = [1, 32], strides = [1, 1]} : vector<1x64xf32> to vector<1x32xf32>
    %200 = vector.extract_strided_slice %198 {offsets = [0, 32], sizes = [1, 32], strides = [1, 1]} : vector<1x64xf32> to vector<1x32xf32>
    %201 = vector.extract_strided_slice %192 {offsets = [0, 64], sizes = [1, 32], strides = [1, 1]} : vector<1x128xf32> to vector<1x32xf32>
    %202 = vector.extract_strided_slice %192 {offsets = [0, 96], sizes = [1, 32], strides = [1, 1]} : vector<1x128xf32> to vector<1x32xf32>
    %203 = arith.mulf %199, %202 : vector<1x32xf32>
    %204 = arith.addf %201, %203 : vector<1x32xf32>
    %205 = math.tanh %204 : vector<1x32xf32>
    %cst_60 = arith.constant 1.000000e+00 : f32
    %206 = vector.broadcast %cst_60 : f32 to vector<1x32xf32>
    %207 = arith.subf %206, %200 : vector<1x32xf32>
    %208 = arith.mulf %207, %205 : vector<1x32xf32>
    %209 = arith.mulf %200, %184 : vector<1x32xf32>
    %210 = arith.addf %208, %209 : vector<1x32xf32>
    %c7_61 = arith.constant 7 : index
    %c0_62 = arith.constant 0 : index
    %211 = vector.load %arg9[%c7_61, %c0_62] : memref<8x32xf32, #tpu.memory_space<vmem>>, vector<1x32xf32>
    tpu.vector_store %arg9[%c7_61, %c0_62], %210 {strides = array<i32>} : memref<8x32xf32, #tpu.memory_space<vmem>>, vector<1x32xf32>,
    %c0_63 = arith.constant 0 : index
    %c0_64 = arith.constant 0 : index
    %212 = vector.load %arg9[%c0_63, %c0_64] : memref<8x32xf32, #tpu.memory_space<vmem>>, vector<8x32xf32>
    %c0_65 = arith.constant 0 : index
    %c0_66 = arith.constant 0 : index
    %213 = vector.load %arg7[%c0_65, %c0_66] : memref<32x128xf32, #tpu.memory_space<vmem>>, vector<32x128xf32>
    %cst_67 = arith.constant dense<0.000000e+00> : vector<8x128xf32>
    %214 = tpu.matmul %212, %213, %cst_67 {dimension_numbers = #tpu.dot_dimension_numbers<[1], [0], [0], [1], [0, 0, 1, 1], [], []>} : vector<8x32xf32>, vector<32x128xf32>, vector<8x128xf32> -> vector<8x128xf32>
    %c0_68 = arith.constant 0 : index
    %c0_69 = arith.constant 0 : index
    %215 = vector.load %arg8[%c0_68, %c0_69] : memref<1x128xf32, #tpu.memory_space<vmem>>, vector<1x128xf32>
    %216 = vector.broadcast %215 : vector<1x128xf32> to vector<8x128xf32>
    %217 = arith.addf %214, %216 : vector<8x128xf32>
    %cst_70 = arith.constant dense<0xFF800000> : vector<8xf32>
    %218 = vector.multi_reduction <maximumf>, %217, %cst_70 [1] : vector<8x128xf32> to vector<8xf32>
    %219 = vector.shape_cast %218 : vector<8xf32> to vector<8x1xf32>
    %220 = vector.broadcast %219 : vector<8x1xf32> to vector<8x128xf32>
    %221 = arith.subf %217, %220 : vector<8x128xf32>
    %222 = math.exp %221 : vector<8x128xf32>
    %cst_71 = arith.constant dense<0.000000e+00> : vector<8xf32>
    %223 = vector.multi_reduction <add>, %222, %cst_71 [1] : vector<8x128xf32> to vector<8xf32>
    %224 = vector.shape_cast %223 : vector<8xf32> to vector<8x1xf32>
    %225 = vector.broadcast %224 : vector<8x1xf32> to vector<8x128xf32>
    %226 = arith.divf %222, %225 : vector<8x128xf32>
    %c0_72 = arith.constant 0 : index
    %c0_73 = arith.constant 0 : index
    %227 = vector.load %arg10[%c0_72, %c0_73] : memref<8x128xf32, #tpu.memory_space<vmem>>, vector<8x128xf32>
    tpu.vector_store %arg10[%c0_72, %c0_73], %226 {strides = array<i32>} : memref<8x128xf32, #tpu.memory_space<vmem>>, vector<8x128xf32>,
    return
  }
  func.func @transform_0(%arg0: i32, %arg1: memref<8xi32, #tpu.memory_space<smem>>) -> (i32, i32) {
    %c0_i32 = arith.constant 0 : i32
    %c0_i32_0 = arith.constant 0 : i32
    %c0_i32_1 = arith.constant 0 : i32
    return %c0_i32, %c0_i32_0 : i32, i32
  }
  func.func @transform_1(%arg0: i32, %arg1: memref<8xi32, #tpu.memory_space<smem>>) -> (i32, i32) {
    %c0_i32 = arith.constant 0 : i32
    %c0_i32_0 = arith.constant 0 : i32
    %c0_i32_1 = arith.constant 0 : i32
    return %c0_i32, %c0_i32_0 : i32, i32
  }
  func.func @transform_2(%arg0: i32, %arg1: memref<8xi32, #tpu.memory_space<smem>>) -> (i32, i32) {
    %c0_i32 = arith.constant 0 : i32
    %c0_i32_0 = arith.constant 0 : i32
    %c0_i32_1 = arith.constant 0 : i32
    return %c0_i32, %c0_i32_0 : i32, i32
  }
  func.func @transform_3(%arg0: i32, %arg1: memref<8xi32, #tpu.memory_space<smem>>) -> (i32, i32) {
    %c0_i32 = arith.constant 0 : i32
    %c0_i32_0 = arith.constant 0 : i32
    %c0_i32_1 = arith.constant 0 : i32
    return %c0_i32, %c0_i32_0 : i32, i32
  }
  func.func @transform_4(%arg0: i32, %arg1: memref<8xi32, #tpu.memory_space<smem>>) -> (i32, i32) {
    %c0_i32 = arith.constant 0 : i32
    %c0_i32_0 = arith.constant 0 : i32
    %c0_i32_1 = arith.constant 0 : i32
    return %c0_i32, %c0_i32_0 : i32, i32
  }
  func.func @transform_5(%arg0: i32, %arg1: memref<8xi32, #tpu.memory_space<smem>>) -> (i32, i32) {
    %c0_i32 = arith.constant 0 : i32
    %c0_i32_0 = arith.constant 0 : i32
    %c0_i32_1 = arith.constant 0 : i32
    return %c0_i32, %c0_i32_0 : i32, i32
  }
  func.func @transform_6(%arg0: i32, %arg1: memref<8xi32, #tpu.memory_space<smem>>) -> (i32, i32) {
    %c0_i32 = arith.constant 0 : i32
    %c0_i32_0 = arith.constant 0 : i32
    %c0_i32_1 = arith.constant 0 : i32
    return %c0_i32, %c0_i32_0 : i32, i32
  }
  func.func @transform_7(%arg0: i32, %arg1: memref<8xi32, #tpu.memory_space<smem>>) -> (i32, i32) {
    %c0_i32 = arith.constant 0 : i32
    %c0_i32_0 = arith.constant 0 : i32
    %c0_i32_1 = arith.constant 0 : i32
    return %c0_i32, %c0_i32_0 : i32, i32
  }
  func.func @transform_8(%arg0: i32, %arg1: memref<8xi32, #tpu.memory_space<smem>>) -> (i32, i32) {
    %c0_i32 = arith.constant 0 : i32
    %c0_i32_0 = arith.constant 0 : i32
    %c0_i32_1 = arith.constant 0 : i32
    return %c0_i32, %c0_i32_0 : i32, i32
  }
}

</mosaic_0001>

<bundles_post_ra>
// kernel: tpu_custom_call.1
= control target key start
LH: loop header
LB: loop body
LE: loop exit
PB: predicated region body
PF: predicated region fallthrough
CT: control target
= control target key end

     0   :  { %s2486_s0 = inlined_call_operand.hbm [shape: s32[8], index: 0, kind: input, shape index: {}]   ;;  %s2487_s1 = inlined_call_operand.vmem [shape: f32[64,32], index: 1, kind: input, shape index: {}]   ;;  %s2488_s2 = inlined_call_operand.vmem [shape: f32[1,32], index: 2, kind: input, shape index: {}]   ;;  %s2489_s3 = inlined_call_operand.vmem [shape: f32[32,128], index: 3, kind: input, shape index: {}]   ;;  %s2490_s4 = inlined_call_operand.vmem [shape: f32[32,128], index: 4, kind: input, shape index: {}]   ;;  %s2491_s5 = inlined_call_operand.vmem [shape: f32[1,128], index: 5, kind: input, shape index: {}]   ;;  %s2492_s6 = inlined_call_operand.vmem [shape: f32[32,128], index: 6, kind: input, shape index: {}]   ;;  %s2493_s7 = inlined_call_operand.vmem [shape: f32[1,128], index: 7, kind: input, shape index: {}]   ;;  %s2494_s8 = inlined_call_operand.hbm [shape: f32[8,32], index: 8, kind: output, shape index: {0}]   ;;  %s2495_s9 = inlined_call_operand.hbm [shape: f32[8,128], index: 9, kind: output, shape index: {1}]  }
   0x1   :  { %s2086_s11 = scalar_lea.hbm %s2486_s0, 16 }
   0x2   :  { %p2087_p0 = scmp.ne.s32.totalorder %s2486_s0, %s2086_s11  ;;  %p2090_p1 = scmp.lt.u32.totalorder %s2086_s11, %s2486_s0 }
   0x4   :  { %p2092_p2 = pnand %p2090_p1, %p2087_p0 }
   0x6   :  { %2095 = shalt.err (!%p2092_p2)  }
   0x7   :  { %s2146_s16 = smov [#allocation3]  }
   0x8   :  { %16 = dma.hbm_to_smem %s2486_s0, 16, %s2146_s16, [#allocation2] }
   0x9   :  { %2140 = dma.done.wait [#allocation2], 16 }
   0xa   :  { %2141 = vsyncadd [#allocation2], 4294967280 }
   0xb   :  { %18 = sfence }
   0xc   :  { %19 = vsyncpa [#allocation5], 0  ;;  %v39_v0 = vld [vmem:[%s2490_s4] sm:$0xff]  ;;  %v40_v1 = vld [vmem:[%s2490_s4 + $0x8] sm:$0xff]  ;;  %v2147_v3 = vmov 0.0|0.0   ;;  %s45_s30 = sld [smem:[#allocation3]] }
   0xd   :  { %v35_v2 = vld [vmem:[%s2489_s3] sm:$0xff]  ;;  %1923 = vmatprep.subr.bf16.mxu0 %v2147_v3  ;;  %1929 = vmatprep.subr.bf16.mxu1 %v2147_v3  ;;  %v2228_v4 = vpack.c.bf16 %v40_v1, %v39_v0  ;;  %v36_v5 = vld [vmem:[%s2489_s3 + $0x8] sm:$0xff]  ;;  %v41_v6 = vld [vmem:[%s2490_s4 + $0x10] sm:$0xff]  ;;  %vm2148_vm0 = vmmov 0   ;;  %v2149_v11 = vmov 0.0  }
   0xe   :  { %v42_v7 = vld [vmem:[%s2490_s4 + $0x18] sm:$0xff]  ;;  %v2239_v8 = vpack.c.bf16 %v36_v5, %v35_v2  ;;  %v37_v9 = vld [vmem:[%s2489_s3 + $0x10] sm:$0xff]  ;;  %1744 = vmatprep.mubr.msk.f32.mxu0 %vm2148_vm0, %v2149_v11  ;;  %1755 = vmatprep.mubr.msk.f32.mxu1 %vm2148_vm0, %v2149_v11 }
   0xf   :  { %v38_v10 = vld [vmem:[%s2489_s3 + $0x18] sm:$0xff]  ;;  %1925 = vmatpush3.bf16.msra.mxu0 %v2228_v4  ;;  %v2252_v12 = vpack.c.bf16 %v42_v7, %v41_v6 }
  0x10   :  { %20 = vsyncpa [#allocation7], 0  ;;  %1931 = vmatpush3.bf16.msra.mxu1 %v2239_v8  ;;  %1926 = vmatprep.subr.bf16.mxu0 %v2147_v3  ;;  %v2256_v13 = vpack.c.bf16 %v38_v10, %v37_v9  ;;  %v44_v14 = vld [vmem:[%s2488_s2] sm:$0x1]  ;;  %vm48_vm1 = vcmask 261120   ;;  %s2150_s18 = smov 32   ;;  %v219_v31 = vlaneseq }
  0x11   :  { %1932 = vmatprep.subr.bf16.mxu1 %v2147_v3  ;;  %v2286_v17 = vld [vmem:[%s2491_s5] sm:$0x1]  ;;  %s2151_s19 = smov 64   ;;  %s1621_s5 = sld [smem:[#allocation3 + $0x1]]  ;;  %vm232_vm2 = vcmask 253952  }
  0x12   :  { %s46_s16 = scalar_lea.vmem %s2487_s1, %s45_s30  ;;  %v220_v32 = vshrl.u32 %v219_v31, 7  ;;  %s2152_s20 = smov 96  }
  0x13   :  { %1928 = vmatpush3.bf16.msra.mxu0 %v2252_v12  ;;  %v47_v15 = vld [vmem:[%s46_s16] sm:$0x1]  ;;  %s1625_s24 = sld [smem:[#allocation3 + $0x2]]  ;;  %s1629_s27 = sld [smem:[#allocation3 + $0x3]] }
  0x14   :  { %1934 = vmatpush3.bf16.msra.mxu1 %v2256_v13  ;;  %1935 = vmatprep.subr.bf16.mxu0 %v2147_v3  ;;  %v221_v33 = vsub.s32 0, %v220_v32  ;;  %s1633_s10 = sld [smem:[#allocation3 + $0x4]]  ;;  %s1637_s3 = sld [smem:[#allocation3 + $0x5]] }
  0x15   :  { %1941 = vmatprep.subr.bf16.mxu1 %v2147_v3  ;;  %s1641_s16 = sld [smem:[#allocation3 + $0x6]]  ;;  %s1645_s21 = sld [smem:[#allocation3 + $0x7]] }
  0x16   :  { %1745 = vmatmul.mubr.msk.f32.vlgmr.msra.gmra.mrb[0].mxu0 %vm48_vm1, %v44_v14  ;;  %v222_v35 = vrot.slane %v44_v14, %v221_v33 }
  0x17   :  { %1756 = vmatmul.mubr.msk.f32.vlgmr.msra.gmra.mrb[0].mxu1 %vm48_vm1, %v47_v15  ;;  %1937 = vmatpush3.bf16.msra.mxu0 %v2228_v4  ;;  %s235_s23 = scalar_lea.vmem %s2487_s1, %s1621_s5 }
  0x18   :  { %1943 = vmatpush3.bf16.msra.mxu1 %v2239_v8  ;;  %1938 = vmatprep.subr.bf16.mxu0 %v2147_v3  ;;  %v236_v36 = vld [vmem:[%s235_s23] sm:$0x1] }
  0x19   :  { %1944 = vmatprep.subr.bf16.mxu1 %v2147_v3  ;;  %1777 = vmatprep.mubr.msk.f32.mxu1 %vm2148_vm0, %v2149_v11  ;;  %s414_s26 = scalar_lea.vmem %s2487_s1, %s1625_s24  ;;  %s593_s30 = scalar_lea.vmem %s2487_s1, %s1629_s27 }
  0x1a   :  { %1766 = vmatprep.mubr.msk.f32.mxu0 %vm2148_vm0, %v2149_v11  ;;  %v415_v58 = vld [vmem:[%s414_s26] sm:$0x1]  ;;  %s772_s13 = scalar_lea.vmem %s2487_s1, %s1633_s10  ;;  %s951_s15 = scalar_lea.vmem %s2487_s1, %s1637_s3 }
  0x1b   :  { %1940 = vmatpush3.bf16.msra.mxu0 %v2252_v12  ;;  %s1130_s5 = scalar_lea.vmem %s2487_s1, %s1641_s16  ;;  %s1309_s24 = scalar_lea.vmem %s2487_s1, %s1645_s21 }
  0x1c   :  { %1946 = vmatpush3.bf16.msra.mxu1 %v2256_v13  ;;  %1947 = vmatprep.subr.bf16.mxu0 %v2147_v3 }
  0x1d   :  { %1953 = vmatprep.subr.bf16.mxu1 %v2147_v3 }
  0x1f   :  { %1778 = vmatmul.mubr.msk.f32.vlgmr.msra.gmra.mrb[2].mxu1 %vm48_vm1, %v236_v36 }
  0x20   :  { %1955 = vmatpush3.bf16.msra.mxu1 %v2239_v8  ;;  %1799 = vmatprep.mubr.msk.f32.mxu1 %vm2148_vm0, %v2149_v11 }
  0x21   :  { %1956 = vmatprep.subr.bf16.mxu1 %v2147_v3 }
  0x24   :  { %1958 = vmatpush3.bf16.msra.mxu1 %v2256_v13 }
  0x25   :  { %1965 = vmatprep.subr.bf16.mxu1 %v2147_v3 }
  0x27   :  { %1800 = vmatmul.mubr.msk.f32.vlgmr.msra.gmra.mrb[4].mxu1 %vm48_vm1, %v415_v58 }
  0x28   :  { %1967 = vmatpush3.bf16.msra.mxu1 %v2239_v8  ;;  %1821 = vmatprep.mubr.msk.f32.mxu1 %vm2148_vm0, %v2149_v11 }
  0x29   :  { %1968 = vmatprep.subr.bf16.mxu1 %v2147_v3 }
  0x2c   :  { %1970 = vmatpush3.bf16.msra.mxu1 %v2256_v13 }
  0x2d   :  { %1977 = vmatprep.subr.bf16.mxu1 %v2147_v3 }
  0xe9   :  { %v118_v16 = vpop.f32.mrb[0].mxu0 }
  0xea   :  { %v191_v18 = vpop.f32.mrb[0].mxu1  ;;  %v1746_v19 = vpop.f32.mrb[1].mxu0 }
  0xeb   :  { %v192_v20 = vadd.f32 %v191_v18, %v118_v16  ;;  %v1757_v21 = vpop.f32.mrb[1].mxu1 }
  0xed   :  { %v195_v22 = vadd.f32 %v192_v20, %v2286_v17 }
  0xef   :  { %203 = vrot.lane.b32.xlu0 %v195_v22, %s2150_s18  ;;  %v1620_v23 = vmul.f32 -1.442695, %v195_v22 }
  0xf1   :  { %2034 = vpow2.f32 %v1620_v23  ;;  %v594_v23 = vld [vmem:[%s593_s30] sm:$0x1] }
  0xf2   :  { %v378_v43 = vpop.f32.mrb[2].mxu1  ;;  %1822 = vmatmul.mubr.msk.f32.vlgmr.msra.gmra.mrb[6].mxu1 %vm48_vm1, %v594_v23 }
  0xf3   :  { %v1779_v44 = vpop.f32.mrb[3].mxu1  ;;  %1979 = vmatpush3.bf16.msra.mxu1 %v2239_v8  ;;  %1843 = vmatprep.mubr.msk.f32.mxu1 %vm2148_vm0, %v2149_v11 }
  0xf4   :  { %1980 = vmatprep.subr.bf16.mxu1 %v2147_v3 }
  0xf7   :  { %1982 = vmatpush3.bf16.msra.mxu1 %v2256_v13 }
  0xf8   :  { %1989 = vmatprep.subr.bf16.mxu1 %v2147_v3 }
  0xfa   :  { %v557_v1 = vpop.f32.mrb[4].mxu1 }
  0xfb   :  { %v2035_v24 = vpop.eup %2034  ;;  %v1801_v2 = vpop.f32.mrb[5].mxu1 }
  0xfc   :  { %v199_v25 = vadd.f32 1.0, %v2035_v24 }
  0xfe   :  { %2036 = vrcp.f32 %v199_v25 }
 0x108   :  { %v2037_v26 = vpop.eup %2036 }
 0x109   :  { %v213_v38 = vsub.f32 1.0, %v2037_v26 }
 0x161   :  { %v204_v27 = vpop.permute.xlu0 %203 }
 0x162   :  { %v206_v28 = vmul.f32 %v2037_v26, %v204_v27 }
 0x164   :  { %208 = vrot.lane.b32.xlu0 %v206_v28, %s2151_s19 }
 0x1d6   :  { %v209_v29 = vpop.permute.xlu0 %208 }
 0x1d7   :  { %v211_v30 = vadd.f32 %v209_v29, %v195_v22 }
 0x1d9   :  { %2038 = vtanh.f32 %v211_v30  ;;  %v736_v30 = vpop.f32.mrb[6].mxu1 }
 0x1da   :  { %v1823_v31 = vpop.f32.mrb[7].mxu1 }
 0x1e3   :  { %v2039_v34 = vpop.eup %2038 }
 0x1e4   :  { %215 = vrot.lane.b32.xlu1 %v2039_v34, %s2152_s20 }
 0x1e8   :  { %223 = vrot.lane.b32.xlu1 %v222_v35, %s2150_s18 }
 0x256   :  { %v216_v37 = vpop.permute.xlu1 %215 }
 0x257   :  { %v218_v40 = vmul.f32 %v216_v37, %v213_v38 }
 0x25a   :  { %v224_v39 = vpop.permute.xlu1 %223 }
 0x25b   :  { %v226_v41 = vmul.f32 %v2037_v26, %v224_v39 }
 0x25d   :  { %v227_v42 = vadd.f32 %v226_v41, %v218_v40 }
 0x25f   :  { %229 = vrot.lane.b32.xlu0 %v227_v42, %s2152_s20 }
 0x2d1   :  { %v230_v45 = vpop.permute.xlu0 %229 }
 0x2d2   :  { %233 = vst.msk [vmem:[#allocation4] sm:$0x1] %vm232_vm2, %v230_v45  ;;  %1767 = vmatmul.mubr.msk.f32.vlgmr.msra.gmra.mrb[2].mxu0 %vm48_vm1, %v230_v45  ;;  %v773_v45 = vld [vmem:[%s772_s13] sm:$0x1] }
 0x2d3   :  { %1949 = vmatpush3.bf16.msra.mxu0 %v2228_v4  ;;  %1788 = vmatprep.mubr.msk.f32.mxu0 %vm2148_vm0, %v2149_v11 }
 0x2d4   :  { %1950 = vmatprep.subr.bf16.mxu0 %v2147_v3  ;;  %1844 = vmatmul.mubr.msk.f32.vlgmr.msra.gmra.mrb[8].mxu1 %vm48_vm1, %v773_v45 }
 0x2d5   :  { %1991 = vmatpush3.bf16.msra.mxu1 %v2239_v8  ;;  %1865 = vmatprep.mubr.msk.f32.mxu1 %vm2148_vm0, %v2149_v11 }
 0x2d6   :  { %1992 = vmatprep.subr.bf16.mxu1 %v2147_v3 }
 0x2d7   :  { %1952 = vmatpush3.bf16.msra.mxu0 %v2252_v12 }
 0x2d8   :  { %1959 = vmatprep.subr.bf16.mxu0 %v2147_v3 }
 0x2d9   :  { %1994 = vmatpush3.bf16.msra.mxu1 %v2256_v13 }
 0x2da   :  { %2001 = vmatprep.subr.bf16.mxu1 %v2147_v3 }
 0x3a5   :  { %v305_v46 = vpop.f32.mrb[2].mxu0 }
 0x3a6   :  { %v379_v47 = vadd.f32 %v378_v43, %v305_v46  ;;  %v1768_v48 = vpop.f32.mrb[3].mxu0 }
 0x3a8   :  { %v382_v49 = vadd.f32 %v379_v47, %v2286_v17 }
 0x3aa   :  { %390 = vrot.lane.b32.xlu1 %v382_v49, %s2150_s18  ;;  %v1624_v50 = vmul.f32 -1.442695, %v382_v49 }
 0x3ac   :  { %2040 = vpow2.f32 %v1624_v50 }
 0x3b6   :  { %v2041_v51 = vpop.eup %2040 }
 0x3b7   :  { %v386_v52 = vadd.f32 1.0, %v2041_v51 }
 0x3b9   :  { %2042 = vrcp.f32 %v386_v52  ;;  %v915_v52 = vpop.f32.mrb[8].mxu1 }
 0x3c3   :  { %v2043_v53 = vpop.eup %2042 }
 0x3c4   :  { %v400_v60 = vsub.f32 1.0, %v2043_v53  ;;  %v406_v62 = vmul.f32 %v2043_v53, %v227_v42 }
 0x41c   :  { %v391_v54 = vpop.permute.xlu1 %390 }
 0x41d   :  { %v393_v55 = vmul.f32 %v2043_v53, %v391_v54  ;;  %v1845_v53 = vpop.f32.mrb[9].mxu1 }
 0x41f   :  { %395 = vrot.lane.b32.xlu0 %v393_v55, %s2151_s19 }
 0x491   :  { %v396_v56 = vpop.permute.xlu0 %395 }
 0x492   :  { %v398_v57 = vadd.f32 %v396_v56, %v382_v49 }
 0x494   :  { %2044 = vtanh.f32 %v398_v57 }
 0x49e   :  { %v2045_v59 = vpop.eup %2044 }
 0x49f   :  { %402 = vrot.lane.b32.xlu1 %v2045_v59, %s2152_s20 }
 0x511   :  { %v403_v61 = vpop.permute.xlu1 %402 }
 0x512   :  { %v405_v63 = vmul.f32 %v403_v61, %v400_v60 }
 0x514   :  { %v407_v0 = vadd.f32 %v406_v62, %v405_v63 }
 0x516   :  { %409 = vrot.lane.b32.xlu0 %v407_v0, %s2152_s20 }
 0x588   :  { %v410_v5 = vpop.permute.xlu0 %409 }
 0x589   :  { %412 = vst.msk [vmem:[#allocation4 + $0x1] sm:$0x1] %vm232_vm2, %v410_v5  ;;  %1789 = vmatmul.mubr.msk.f32.vlgmr.msra.gmra.mrb[4].mxu0 %vm48_vm1, %v410_v5  ;;  %v952_v5 = vld [vmem:[%s951_s15] sm:$0x1] }
 0x58a   :  { %1961 = vmatpush3.bf16.msra.mxu0 %v2228_v4  ;;  %1810 = vmatprep.mubr.msk.f32.mxu0 %vm2148_vm0, %v2149_v11 }
 0x58b   :  { %1962 = vmatprep.subr.bf16.mxu0 %v2147_v3  ;;  %1866 = vmatmul.mubr.msk.f32.vlgmr.msra.gmra.mrb[10].mxu1 %vm48_vm1, %v952_v5 }
 0x58c   :  { %2003 = vmatpush3.bf16.msra.mxu1 %v2239_v8  ;;  %1887 = vmatprep.mubr.msk.f32.mxu1 %vm2148_vm0, %v2149_v11 }
 0x58d   :  { %2004 = vmatprep.subr.bf16.mxu1 %v2147_v3 }
 0x58e   :  { %1964 = vmatpush3.bf16.msra.mxu0 %v2252_v12 }
 0x58f   :  { %1971 = vmatprep.subr.bf16.mxu0 %v2147_v3 }
 0x590   :  { %2006 = vmatpush3.bf16.msra.mxu1 %v2256_v13 }
 0x591   :  { %2013 = vmatprep.subr.bf16.mxu1 %v2147_v3 }
 0x65c   :  { %v484_v6 = vpop.f32.mrb[4].mxu0 }
 0x65d   :  { %v558_v7 = vadd.f32 %v557_v1, %v484_v6  ;;  %v1790_v9 = vpop.f32.mrb[5].mxu0 }
 0x65f   :  { %v561_v10 = vadd.f32 %v558_v7, %v2286_v17 }
 0x661   :  { %569 = vrot.lane.b32.xlu1 %v561_v10, %s2150_s18  ;;  %v1628_v14 = vmul.f32 -1.442695, %v561_v10 }
 0x663   :  { %2046 = vpow2.f32 %v1628_v14 }
 0x66d   :  { %v2047_v15 = vpop.eup %2046 }
 0x66e   :  { %v565_v16 = vadd.f32 1.0, %v2047_v15 }
 0x670   :  { %2048 = vrcp.f32 %v565_v16  ;;  %v1094_v16 = vpop.f32.mrb[10].mxu1 }
 0x67a   :  { %v2049_v18 = vpop.eup %2048 }
 0x67b   :  { %v579_v25 = vsub.f32 1.0, %v2049_v18  ;;  %v585_v27 = vmul.f32 %v2049_v18, %v407_v0 }
 0x6d3   :  { %v570_v19 = vpop.permute.xlu1 %569 }
 0x6d4   :  { %v572_v20 = vmul.f32 %v2049_v18, %v570_v19  ;;  %v1867_v18 = vpop.f32.mrb[11].mxu1 }
 0x6d5   :  { %v1491_v18 = vld [vmem:[%s2492_s6 + $0x18] sm:$0xff] }
 0x6d6   :  { %574 = vrot.lane.b32.xlu0 %v572_v20, %s2151_s19 }
 0x748   :  { %v575_v21 = vpop.permute.xlu0 %574 }
 0x749   :  { %v577_v22 = vadd.f32 %v575_v21, %v561_v10 }
 0x74b   :  { %2050 = vtanh.f32 %v577_v22 }
 0x755   :  { %v2051_v24 = vpop.eup %2050 }
 0x756   :  { %581 = vrot.lane.b32.xlu1 %v2051_v24, %s2152_s20 }
 0x7c8   :  { %v582_v26 = vpop.permute.xlu1 %581 }
 0x7c9   :  { %v584_v28 = vmul.f32 %v582_v26, %v579_v25 }
 0x7cb   :  { %v586_v29 = vadd.f32 %v585_v27, %v584_v28 }
 0x7cd   :  { %588 = vrot.lane.b32.xlu0 %v586_v29, %s2152_s20 }
 0x83f   :  { %v589_v32 = vpop.permute.xlu0 %588 }
 0x840   :  { %591 = vst.msk [vmem:[#allocation4 + $0x2] sm:$0x1] %vm232_vm2, %v589_v32  ;;  %1811 = vmatmul.mubr.msk.f32.vlgmr.msra.gmra.mrb[6].mxu0 %vm48_vm1, %v589_v32  ;;  %v1131_v32 = vld [vmem:[%s1130_s5] sm:$0x1] }
 0x841   :  { %1973 = vmatpush3.bf16.msra.mxu0 %v2228_v4  ;;  %1832 = vmatprep.mubr.msk.f32.mxu0 %vm2148_vm0, %v2149_v11 }
 0x842   :  { %1974 = vmatprep.subr.bf16.mxu0 %v2147_v3  ;;  %1888 = vmatmul.mubr.msk.f32.vlgmr.msra.gmra.mrb[12].mxu1 %vm48_vm1, %v1131_v32 }
 0x843   :  { %2015 = vmatpush3.bf16.msra.mxu1 %v2239_v8  ;;  %1909 = vmatprep.mubr.msk.f32.mxu1 %vm2148_vm0, %v2149_v11 }
 0x844   :  { %2016 = vmatprep.subr.bf16.mxu1 %v2147_v3 }
 0x845   :  { %1976 = vmatpush3.bf16.msra.mxu0 %v2252_v12 }
 0x846   :  { %1983 = vmatprep.subr.bf16.mxu0 %v2147_v3 }
 0x847   :  { %2018 = vmatpush3.bf16.msra.mxu1 %v2256_v13 }
 0x913   :  { %v663_v33 = vpop.f32.mrb[6].mxu0 }
 0x914   :  { %v737_v34 = vadd.f32 %v736_v30, %v663_v33  ;;  %v1812_v35 = vpop.f32.mrb[7].mxu0 }
 0x916   :  { %v740_v36 = vadd.f32 %v737_v34, %v2286_v17 }
 0x918   :  { %748 = vrot.lane.b32.xlu1 %v740_v36, %s2150_s18  ;;  %v1632_v37 = vmul.f32 -1.442695, %v740_v36 }
 0x91a   :  { %2052 = vpow2.f32 %v1632_v37 }
 0x924   :  { %v2053_v38 = vpop.eup %2052 }
 0x925   :  { %v744_v39 = vadd.f32 1.0, %v2053_v38 }
 0x927   :  { %2054 = vrcp.f32 %v744_v39  ;;  %v1273_v39 = vpop.f32.mrb[12].mxu1 }
 0x931   :  { %v2055_v40 = vpop.eup %2054 }
 0x932   :  { %v758_v47 = vsub.f32 1.0, %v2055_v40  ;;  %v764_v49 = vmul.f32 %v2055_v40, %v586_v29 }
 0x98a   :  { %v749_v41 = vpop.permute.xlu1 %748 }
 0x98b   :  { %v751_v42 = vmul.f32 %v2055_v40, %v749_v41  ;;  %v1889_v40 = vpop.f32.mrb[13].mxu1 }
 0x98d   :  { %753 = vrot.lane.b32.xlu0 %v751_v42, %s2151_s19 }
 0x9ff   :  { %v754_v43 = vpop.permute.xlu0 %753 }
 0xa00   :  { %v756_v44 = vadd.f32 %v754_v43, %v740_v36 }
 0xa02   :  { %2056 = vtanh.f32 %v756_v44 }
 0xa0c   :  { %v2057_v46 = vpop.eup %2056 }
 0xa0d   :  { %760 = vrot.lane.b32.xlu1 %v2057_v46, %s2152_s20 }
 0xa7f   :  { %v761_v48 = vpop.permute.xlu1 %760 }
 0xa80   :  { %v763_v50 = vmul.f32 %v761_v48, %v758_v47 }
 0xa82   :  { %v765_v51 = vadd.f32 %v764_v49, %v763_v50  ;;  %v1310_v50 = vld [vmem:[%s1309_s24] sm:$0x1] }
 0xa83   :  { %1910 = vmatmul.mubr.msk.f32.vlgmr.msra.gmra.mrb[14].mxu1 %vm48_vm1, %v1310_v50 }
 0xa84   :  { %767 = vrot.lane.b32.xlu0 %v765_v51, %s2152_s20 }
 0xaf6   :  { %v768_v54 = vpop.permute.xlu0 %767 }
 0xaf7   :  { %770 = vst.msk [vmem:[#allocation4 + $0x3] sm:$0x1] %vm232_vm2, %v768_v54  ;;  %1833 = vmatmul.mubr.msk.f32.vlgmr.msra.gmra.mrb[8].mxu0 %vm48_vm1, %v768_v54 }
 0xaf8   :  { %1985 = vmatpush3.bf16.msra.mxu0 %v2228_v4  ;;  %1854 = vmatprep.mubr.msk.f32.mxu0 %vm2148_vm0, %v2149_v11 }
 0xaf9   :  { %1986 = vmatprep.subr.bf16.mxu0 %v2147_v3 }
 0xafc   :  { %1988 = vmatpush3.bf16.msra.mxu0 %v2252_v12 }
 0xafd   :  { %1995 = vmatprep.subr.bf16.mxu0 %v2147_v3 }
 0xbca   :  { %v842_v55 = vpop.f32.mrb[8].mxu0 }
 0xbcb   :  { %v916_v56 = vadd.f32 %v915_v52, %v842_v55  ;;  %v1834_v57 = vpop.f32.mrb[9].mxu0 }
 0xbcc   :  { %v1452_v57 = vpop.f32.mrb[14].mxu1 }
 0xbcd   :  { %v919_v58 = vadd.f32 %v916_v56, %v2286_v17 }
 0xbcf   :  { %927 = vrot.lane.b32.xlu1 %v919_v58, %s2150_s18  ;;  %v1636_v59 = vmul.f32 -1.442695, %v919_v58 }
 0xbd1   :  { %2058 = vpow2.f32 %v1636_v59 }
 0xbdb   :  { %v2059_v60 = vpop.eup %2058 }
 0xbdc   :  { %v923_v61 = vadd.f32 1.0, %v2059_v60 }
 0xbde   :  { %2060 = vrcp.f32 %v923_v61 }
 0xbe8   :  { %v2061_v62 = vpop.eup %2060 }
 0xbe9   :  { %v937_v7 = vsub.f32 1.0, %v2061_v62  ;;  %v943_v10 = vmul.f32 %v2061_v62, %v765_v51 }
 0xc41   :  { %v928_v63 = vpop.permute.xlu1 %927 }
 0xc42   :  { %v930_v0 = vmul.f32 %v2061_v62, %v928_v63 }
 0xc44   :  { %932 = vrot.lane.b32.xlu0 %v930_v0, %s2151_s19 }
 0xcb6   :  { %v933_v1 = vpop.permute.xlu0 %932 }
 0xcb7   :  { %v935_v2 = vadd.f32 %v933_v1, %v919_v58  ;;  %v1911_v58 = vpop.f32.mrb[15].mxu1 }
 0xcb9   :  { %2062 = vtanh.f32 %v935_v2 }
 0xcc3   :  { %v2063_v6 = vpop.eup %2062 }
 0xcc4   :  { %939 = vrot.lane.b32.xlu1 %v2063_v6, %s2152_s20 }
 0xd36   :  { %v940_v9 = vpop.permute.xlu1 %939 }
 0xd37   :  { %v942_v14 = vmul.f32 %v940_v9, %v937_v7 }
 0xd39   :  { %v944_v15 = vadd.f32 %v943_v10, %v942_v14  ;;  %v1489_v14 = vld [vmem:[%s2492_s6 + $0x8] sm:$0xff] }
 0xd3b   :  { %946 = vrot.lane.b32.xlu0 %v944_v15, %s2152_s20 }
 0xdad   :  { %v947_v19 = vpop.permute.xlu0 %946 }
 0xdae   :  { %949 = vst.msk [vmem:[#allocation4 + $0x4] sm:$0x1] %vm232_vm2, %v947_v19  ;;  %1855 = vmatmul.mubr.msk.f32.vlgmr.msra.gmra.mrb[10].mxu0 %vm48_vm1, %v947_v19 }
 0xdaf   :  { %1997 = vmatpush3.bf16.msra.mxu0 %v2228_v4  ;;  %1876 = vmatprep.mubr.msk.f32.mxu0 %vm2148_vm0, %v2149_v11 }
 0xdb0   :  { %1998 = vmatprep.subr.bf16.mxu0 %v2147_v3 }
 0xdb3   :  { %2000 = vmatpush3.bf16.msra.mxu0 %v2252_v12 }
 0xdb4   :  { %2007 = vmatprep.subr.bf16.mxu0 %v2147_v3 }
 0xe81   :  { %v1021_v20 = vpop.f32.mrb[10].mxu0 }
 0xe82   :  { %v1095_v21 = vadd.f32 %v1094_v16, %v1021_v20  ;;  %v1856_v22 = vpop.f32.mrb[11].mxu0  ;;  %v1490_v16 = vld [vmem:[%s2492_s6 + $0x10] sm:$0xff] }
 0xe83   :  { %v2023_v19 = vpack.c.bf16 %v1491_v18, %v1490_v16 }
 0xe84   :  { %v1098_v23 = vadd.f32 %v1095_v21, %v2286_v17 }
 0xe86   :  { %1106 = vrot.lane.b32.xlu1 %v1098_v23, %s2150_s18  ;;  %v1640_v24 = vmul.f32 -1.442695, %v1098_v23 }
 0xe88   :  { %2064 = vpow2.f32 %v1640_v24 }
 0xe92   :  { %v2065_v25 = vpop.eup %2064 }
 0xe93   :  { %v1102_v26 = vadd.f32 1.0, %v2065_v25 }
 0xe95   :  { %2066 = vrcp.f32 %v1102_v26 }
 0xe9f   :  { %v2067_v27 = vpop.eup %2066 }
 0xea0   :  { %v1116_v34 = vsub.f32 1.0, %v2067_v27  ;;  %v1122_v36 = vmul.f32 %v2067_v27, %v944_v15 }
 0xef8   :  { %v1107_v28 = vpop.permute.xlu1 %1106 }
 0xef9   :  { %v1109_v29 = vmul.f32 %v2067_v27, %v1107_v28  ;;  %v1649_v27 = vld [vmem:[%s2493_s7] ss:$0 sm:$0xff] }
 0xefb   :  { %1111 = vrot.lane.b32.xlu0 %v1109_v29, %s2151_s19 }
 0xf6d   :  { %v1112_v30 = vpop.permute.xlu0 %1111 }
 0xf6e   :  { %v1114_v31 = vadd.f32 %v1112_v30, %v1098_v23 }
 0xf70   :  { %2068 = vtanh.f32 %v1114_v31 }
 0xf7a   :  { %v2069_v33 = vpop.eup %2068 }
 0xf7b   :  { %1118 = vrot.lane.b32.xlu1 %v2069_v33, %s2152_s20 }
 0xfed   :  { %v1119_v35 = vpop.permute.xlu1 %1118 }
 0xfee   :  { %v1121_v37 = vmul.f32 %v1119_v35, %v1116_v34 }
 0xff0   :  { %v1123_v38 = vadd.f32 %v1122_v36, %v1121_v37 }
 0xff2   :  { %1125 = vrot.lane.b32.xlu0 %v1123_v38, %s2152_s20 }
0x1064   :  { %v1126_v41 = vpop.permute.xlu0 %1125 }
0x1065   :  { %1128 = vst.msk [vmem:[#allocation4 + $0x5] sm:$0x1] %vm232_vm2, %v1126_v41  ;;  %1877 = vmatmul.mubr.msk.f32.vlgmr.msra.gmra.mrb[12].mxu0 %vm48_vm1, %v1126_v41 }
0x1066   :  { %2009 = vmatpush3.bf16.msra.mxu0 %v2228_v4  ;;  %1898 = vmatprep.mubr.msk.f32.mxu0 %vm2148_vm0, %v2149_v11 }
0x1067   :  { %2010 = vmatprep.subr.bf16.mxu0 %v2147_v3 }
0x106a   :  { %2012 = vmatpush3.bf16.msra.mxu0 %v2252_v12 }
0x106b   :  { %2019 = vmatprep.subr.bf16.mxu0 %v2147_v3 }
0x1138   :  { %v1200_v8 = vpop.f32.mrb[12].mxu0 }
0x1139   :  { %v1274_v13 = vadd.f32 %v1273_v39, %v1200_v8  ;;  %v1878_v42 = vpop.f32.mrb[13].mxu0 }
0x113b   :  { %v1277_v43 = vadd.f32 %v1274_v13, %v2286_v17 }
0x113d   :  { %1285 = vrot.lane.b32.xlu1 %v1277_v43, %s2150_s18  ;;  %v1644_v44 = vmul.f32 -1.442695, %v1277_v43 }
0x113f   :  { %2070 = vpow2.f32 %v1644_v44 }
0x1149   :  { %v2071_v45 = vpop.eup %2070 }
0x114a   :  { %v1281_v4 = vadd.f32 1.0, %v2071_v45 }
0x114c   :  { %2072 = vrcp.f32 %v1281_v4 }
0x1156   :  { %v2073_v46 = vpop.eup %2072 }
0x1157   :  { %v1295_v52 = vsub.f32 1.0, %v2073_v46  ;;  %v1301_v54 = vmul.f32 %v2073_v46, %v1123_v38 }
0x11af   :  { %v1286_v47 = vpop.permute.xlu1 %1285 }
0x11b0   :  { %v1288_v48 = vmul.f32 %v2073_v46, %v1286_v47 }
0x11b2   :  { %1290 = vrot.lane.b32.xlu0 %v1288_v48, %s2151_s19 }
0x1224   :  { %v1291_v12 = vpop.permute.xlu0 %1290 }
0x1225   :  { %v1293_v49 = vadd.f32 %v1291_v12, %v1277_v43 }
0x1227   :  { %2074 = vtanh.f32 %v1293_v49 }
0x1231   :  { %v2075_v51 = vpop.eup %2074 }
0x1232   :  { %1297 = vrot.lane.b32.xlu1 %v2075_v51, %s2152_s20 }
0x12a4   :  { %v1298_v53 = vpop.permute.xlu1 %1297 }
0x12a5   :  { %v1300_v55 = vmul.f32 %v1298_v53, %v1295_v52 }
0x12a7   :  { %v1302_v56 = vadd.f32 %v1301_v54, %v1300_v55 }
0x12a9   :  { %1304 = vrot.lane.b32.xlu0 %v1302_v56, %s2152_s20 }
0x131b   :  { %v1305_v59 = vpop.permute.xlu0 %1304 }
0x131c   :  { %1307 = vst.msk [vmem:[#allocation4 + $0x6] sm:$0x1] %vm232_vm2, %v1305_v59  ;;  %1899 = vmatmul.mubr.msk.f32.vlgmr.msra.gmra.mrb[14].mxu0 %vm48_vm1, %v1305_v59 }
0x131d   :  { %1920 = vmatprep.mubr.msk.f32.mxu0 %vm2148_vm0, %v2149_v11 }
0x13ef   :  { %v1379_v60 = vpop.f32.mrb[14].mxu0 }
0x13f0   :  { %v1453_v61 = vadd.f32 %v1452_v57, %v1379_v60  ;;  %v1900_v62 = vpop.f32.mrb[15].mxu0 }
0x13f2   :  { %v1456_v63 = vadd.f32 %v1453_v61, %v2286_v17  ;;  %v1488_v17 = vld [vmem:[%s2492_s6] sm:$0xff] }
0x13f3   :  { %v2020_v15 = vpack.c.bf16 %v1489_v14, %v1488_v17 }
0x13f4   :  { %1464 = vrot.lane.b32.xlu1 %v1456_v63, %s2150_s18  ;;  %v1648_v0 = vmul.f32 -1.442695, %v1456_v63 }
0x13f5   :  { %2021 = vmatpush3.bf16.msra.mxu0 %v2020_v15 }
0x13f6   :  { %2076 = vpow2.f32 %v1648_v0  ;;  %2022 = vmatprep.subr.bf16.mxu0 %v2147_v3 }
0x13f9   :  { %2024 = vmatpush3.bf16.msra.mxu0 %v2023_v19 }
0x1400   :  { %v2077_v1 = vpop.eup %2076 }
0x1401   :  { %v1460_v2 = vadd.f32 1.0, %v2077_v1 }
0x1403   :  { %2078 = vrcp.f32 %v1460_v2 }
0x140d   :  { %v2079_v5 = vpop.eup %2078 }
0x140e   :  { %v1474_v20 = vsub.f32 1.0, %v2079_v5  ;;  %v1480_v22 = vmul.f32 %v2079_v5, %v1302_v56 }
0x1466   :  { %v1465_v6 = vpop.permute.xlu1 %1464 }
0x1467   :  { %v1467_v7 = vmul.f32 %v2079_v5, %v1465_v6 }
0x1469   :  { %1469 = vrot.lane.b32.xlu0 %v1467_v7, %s2151_s19 }
0x14db   :  { %v1470_v9 = vpop.permute.xlu0 %1469 }
0x14dc   :  { %v1472_v10 = vadd.f32 %v1470_v9, %v1456_v63 }
0x14de   :  { %2080 = vtanh.f32 %v1472_v10 }
0x14e8   :  { %v2081_v11 = vpop.eup %2080 }
0x14e9   :  { %1476 = vrot.lane.b32.xlu1 %v2081_v11, %s2152_s20 }
0x155b   :  { %v1477_v21 = vpop.permute.xlu1 %1476 }
0x155c   :  { %v1479_v23 = vmul.f32 %v1477_v21, %v1474_v20 }
0x155e   :  { %v1481_v24 = vadd.f32 %v1480_v22, %v1479_v23 }
0x1560   :  { %1483 = vrot.lane.b32.xlu0 %v1481_v24, %s2152_s20  ;;  %s2153_s20 = smov [#allocation4]  }
0x1561   :  { %s1588_s30 = sshll.u32 %s2153_s20, 4  ;;  %s1589_s30 = int_to_ptr.vmem [resolvable:$true] %s1588_s30 }
0x1562   :  { %s2096_s10 = scalar_lea.vmem %s1589_s30, 128  ;;  %p2101_p4 = scmp.lt.s32.totalorder %s1589_s30, %s1589_s30 }
0x1563   :  { %p2097_p3 = scmp.ne.s32.totalorder %s1589_s30, %s2096_s10  ;;  %p2102_p5 = scmp.lt.s32.totalorder %s2096_s10, %s2096_s10 }
0x1565   :  { %p2103_p6 = por %p2102_p5, %p2101_p4 }
0x1567   :  { %p2104_p7 = pnand %p2103_p6, %p2097_p3 }
0x15d2   :  { %v1484_v25 = vpop.permute.xlu0 %1483 }
0x15d3   :  { %1486 = vst.msk [vmem:[#allocation4 + $0x7] sm:$0x1] %vm232_vm2, %v1484_v25 }
0x15da   :  { %v1487_v26 = vld [vmem:[#allocation4] sm:$0xff] }
0x15db   :  { %1921 = vmatmul.mubr.msk.f32.vlgmr.msra.gmra.mrb[16].mxu0 %vm48_vm1, %v1487_v26 }
0x16ae   :  { %v1568_v28 = vpop.f32.mrb[16].mxu0 }
0x16af   :  { %v1569_v3 = vadd.f32 %v1649_v27, %v1568_v28  ;;  %v1922_v29 = vpop.f32.mrb[17].mxu0 }
0x16b1   :  { %1572 = vmax.xlane.f32.xlu1 %v1569_v3 }
0x173e   :  { %v1573_v30 = vpop.xlane.xlu1 %1572 }
0x173f   :  { %v1574_v31 = vsub.f32 %v1569_v3, %v1573_v30 }
0x1741   :  { %v1575_v32 = vmul.f32 1.442695, %v1574_v31 }
0x1743   :  { %2082 = vpow2.f32 %v1575_v32 }
0x174d   :  { %v2083_v33 = vpop.eup %2082 }
0x174e   :  { %1577 = vadd.xlane.f32.xlu0 %v2083_v33 }
0x174f   :  { %2107 = shalt.err (!%p2104_p7)
}
0x1750   :  { %s2108_s12 = scalar_lea.hbm %s2494_s8, 128 }
0x1751   :  { %p2109_p8 = scmp.ne.s32.totalorder %s2494_s8, %s2108_s12  ;;  %p2112_p9 = scmp.lt.u32.totalorder %s2108_s12, %s2494_s8 }
0x1753   :  { %p2114_p10 = pnand %p2112_p9, %p2109_p8 }
0x1755   :  { %2117 = shalt.err (!%p2114_p10)
}
0x1756   :  { %1591 = dma.vmem_to_hbm [thread:$0]  %s1589_s30, 128, %s2494_s8, [#allocation5]  }
0x1757   :  { %s2154_s2 = smov [#allocation6]  }
0x1758   :  { %s1598_s17 = sshll.u32 %s2154_s2, 4  ;;  %s1599_s17 = int_to_ptr.vmem [resolvable:$true] %s1598_s17 }
0x1759   :  { %s2118_s5 = scalar_lea.vmem %s1599_s17, 128  ;;  %p2123_p12 = scmp.lt.s32.totalorder %s1599_s17, %s1599_s17 }
0x175a   :  { %p2119_p11 = scmp.ne.s32.totalorder %s1599_s17, %s2118_s5  ;;  %p2124_p13 = scmp.lt.s32.totalorder %s2118_s5, %s2118_s5 }
0x175c   :  { %p2125_p0 = por %p2124_p13, %p2123_p12 }
0x175e   :  { %p2126_p1 = pnand %p2125_p0, %p2119_p11 }
0x17db   :  { %v1578_v34 = vpop.xlane.xlu0 %1577 }
0x17dc   :  { %2084 = vrcp.f32 %v1578_v34 }
0x17e6   :  { %v2085_v35 = vpop.eup %2084 }
0x17e7   :  { %v1580_v36 = vmul.f32 %v2085_v35, %v2083_v33 }
0x17e9   :  { %1581 = vst [vmem:[#allocation6] sm:$0xff] %v1580_v36 }
0x17ea   :  { %2129 = shalt.err (!%p2126_p1)
}
0x17eb   :  { %s2130_s23 = scalar_lea.hbm %s2495_s9, 128 }
0x17ec   :  { %p2131_p2 = scmp.ne.s32.totalorder %s2495_s9, %s2130_s23  ;;  %p2134_p3 = scmp.lt.u32.totalorder %s2130_s23, %s2495_s9 }
0x17ee   :  { %p2136_p4 = pnand %p2134_p3, %p2131_p2 }
0x17f0   :  { %2139 = shalt.err (!%p2136_p4)
}
0x17f1   :  { %1601 = dma.vmem_to_hbm [thread:$0]  %s1599_s17, 128, %s2495_s9, [#allocation7]  }
0x17f2   :  { %2142 = dma.done.wait [#allocation5], 128  }
0x17f3   :  { %2143 = vsyncadd [#allocation5], 4294967168 }
0x17f4   :  { %2144 = dma.done.wait [#allocation7], 128  }
0x17f5   :  { %2145 = vsyncadd [#allocation7], 4294967168 }
0x17f6   :  { %1608 = vsyncpa [#allocation5], 1 }
0x17f7   :  { %1609 = vsyncpa [#allocation7], 1 }

</bundles_post_ra>
